<compile_context>
chip_gen: v6e
topology: v6e:2x2x1
jax: 0.10.0
libtpu: 0.0.40
codegen_flags: <defaults>
</compile_context>

<pallas_src>
import jax
import jax.numpy as jnp
import numpy as np
from jax.experimental import pallas as pl
from jax.experimental.pallas import tpu as pltpu

PRELU_ALPHA = 0.25  # nn.PReLU() deterministic default init
IN_EPS = 1e-5       # InstanceNorm2d default eps


def monai_network_forward(x, weight, bias):
    """x: (N, C_in, H, W) f32; weight: (C_out, C_in, 3, 3) f32; bias: (C_out,) f32."""
    n, c_in, h, w_dim = x.shape
    c_out = weight.shape[0]
    hw = h * w_dim
    k9 = 9 * c_in

    w2 = w_dim + 2                      # padded row width
    lp = (h + 2) * w2                   # flattened padded image length
    lpad = ((lp + 127) // 128) * 128    # lane-dense length (multiple of 128)

    # --- wrapper glue: spatial pad + lane-flatten (no im2col blowup) ---
    x_pad = jnp.pad(x, ((0, 0), (0, 0), (1, 1), (1, 1)))           # (N, C_in, H+2, W+2)
    img = x_pad.reshape(n, c_in, lp)
    img = jnp.pad(img, ((0, 0), (0, 0), (0, lpad - lp))).astype(jnp.bfloat16)

    # weight[o, c, dy, dx] pairs with tap (dy, dx), channel c  ->  K = (dy*3+dx)*C_in + c
    w_k = jnp.transpose(weight, (0, 2, 3, 1)).reshape(c_out, k9).astype(jnp.bfloat16)
    b_k = bias.reshape(c_out, 1).astype(jnp.float32)

    # Valid output lanes in padded-row coordinates: a = y*(W+2) + x, y < H, x < W.
    lane = np.arange(lpad)
    valid = ((lane // w2) < h) & ((lane % w2) < w_dim) & (lane < lp)
    mask = jnp.asarray(valid.reshape(1, lpad), dtype=jnp.float32)

    # Tap (dy, dx): input lane = output lane + dy*(W+2) + dx.  Shifts stay within
    # the zero pad for all valid output lanes, so roll wrap-around is harmless.
    shifts = tuple(dy * w2 + dx for dy in range(3) for dx in range(3))

    def kernel(img_ref, w_ref, b_ref, m_ref, o_ref, p_ref):
        """One batch element, lane-dense padded-spatial layout.

        img_ref: (1, C_in, Lpad)   bf16  lane-flattened zero-padded image
        w_ref:   (C_out, 9*C_in)   bf16  conv weights, K = (dy*3+dx)*C_in + c
        b_ref:   (C_out, 1)        f32   conv bias
        m_ref:   (1, Lpad)         f32   1.0 on the H*W valid output lanes
        o_ref:   (1, C_out, Lpad)  f32   output (padded spatial as lanes)
        p_ref:   (9*C_in, Lpad)    f32   VMEM scratch: in-kernel im2col matrix
        """
        imgf = img_ref[0].astype(jnp.float32)                        # (C_in, Lpad)

        # --- in-kernel im2col: 9 lane-rolls (XLU) into the scratch patch matrix ---
        for t, s in enumerate(shifts):
            tap = imgf if s == 0 else pltpu.roll(imgf, lpad - s, 1)  # lane a <- a + s
            p_ref[pl.ds(t * c_in, c_in), :] = tap

        # --- 3x3 "same" convolution as a single MXU matmul, f32 accumulation ---
        p = p_ref[...].astype(jnp.bfloat16)                          # (9*C_in, Lpad)
        acc = jnp.dot(w_ref[...], p,
                      preferred_element_type=jnp.float32)            # (C_out, Lpad)
        acc = acc + b_ref[...]                                       # (C_out, 1) bcast

        # --- InstanceNorm2d (no affine), masked single-pass stats in f32 ---
        m = m_ref[...]                                               # (1, Lpad)
        inv_hw = 1.0 / hw
        acc_m = acc * m
        s1 = jnp.sum(acc_m, axis=1, keepdims=True)                   # (C_out, 1)
        s2 = jnp.sum(acc_m * acc, axis=1, keepdims=True)             # (C_out, 1)
        mean = s1 * inv_hw
        var = s2 * inv_hw - mean * mean                              # biased variance
        inv_std = jax.lax.rsqrt(var + IN_EPS)

        # --- normalize + PReLU (single shared parameter), fused epilogue ---
        y = (acc - mean) * inv_std
        y = jnp.where(y >= 0, y, PRELU_ALPHA * y)

        o_ref[0] = y.astype(o_ref.dtype)

    out_flat = pl.pallas_call(
        kernel,
        out_shape=jax.ShapeDtypeStruct((n, c_out, lpad), jnp.float32),
        grid=(n,),
        in_specs=[
            pl.BlockSpec((1, c_in, lpad), lambda i: (i, 0, 0)),
            pl.BlockSpec((c_out, k9), lambda i: (0, 0)),
            pl.BlockSpec((c_out, 1), lambda i: (0, 0)),
            pl.BlockSpec((1, lpad), lambda i: (0, 0)),
        ],
        out_specs=pl.BlockSpec((1, c_out, lpad), lambda i: (i, 0, 0)),
        scratch_shapes=[pltpu.VMEM((k9, lpad), jnp.float32)],
        compiler_params=pltpu.CompilerParams(
            dimension_semantics=("parallel",),
            vmem_limit_bytes=32 * 1024 * 1024,
        ),
    )(img, w_k, b_k, mask)

    # Crop padded-row lane layout back to (H, W): lane a = y*(W+2) + x.
    out = out_flat[:, :, :lp].reshape(n, c_out, h + 2, w2)[:, :, :h, :w_dim]
    return out.astype(x.dtype)


def _reference_forward(x, weight, bias):
    """Pure-JAX f32 reference of the same forward pass (PyTorch/MONAI semantics)."""
    y = jax.lax.conv_general_dilated(
        x, weight, window_strides=(1, 1), padding=((1, 1), (1, 1)),
        dimension_numbers=("NCHW", "OIHW", "NCHW"))
    y = y + bias[None, :, None, None]
    mean = jnp.mean(y, axis=(2, 3), keepdims=True)
    var = jnp.mean((y - mean) ** 2, axis=(2, 3), keepdims=True)
    y = (y - mean) * jax.lax.rsqrt(var + IN_EPS)
    return jnp.where(y >= 0, y, PRELU_ALPHA * y)


if __name__ == "__main__":
    # Small shapes consistent with a 2D (spatial_dims=2) MONAI wrapper.
    N, C_IN, C_OUT, H, W = 2, 4, 8, 16, 16

    key = jax.random.PRNGKey(0)
    kx, kw, kb = jax.random.split(key, 3)
    x = jax.random.normal(kx, (N, C_IN, H, W), dtype=jnp.float32)
    weight = 0.1 * jax.random.normal(kw, (C_OUT, C_IN, 3, 3), dtype=jnp.float32)
    bias = 0.1 * jax.random.normal(kb, (C_OUT,), dtype=jnp.float32)

    out = jax.block_until_ready(jax.jit(monai_network_forward)(x, weight, bias))
    ref = jax.block_until_ready(_reference_forward(x, weight, bias))

    # bf16 MXU operands (f32 accumulation) => slightly looser tolerance than f32.
    np.testing.assert_allclose(np.asarray(out), np.asarray(ref),
                               rtol=3e-2, atol=3e-2)

    print("KERNEL_OK")
</pallas_src>

<mosaic_0001>
module attributes {stable_mosaic.version = 11 : i64} {
  func.func @kernel(%arg0: i32, %arg1: memref<1x4x384xbf16, #tpu.memory_space<vmem>>, %arg2: memref<8x36xbf16, #tpu.memory_space<vmem>>, %arg3: memref<8x1xf32, #tpu.memory_space<vmem>>, %arg4: memref<1x384xf32, #tpu.memory_space<vmem>>, %arg5: memref<1x8x384xf32, #tpu.memory_space<vmem>>, %arg6: memref<36x384xf32, #tpu.memory_space<vmem>>) attributes {dimension_semantics = [#tpu.dimension_semantics<parallel>], iteration_bounds = array<i64: 2>, scalar_prefetch = 0 : i64, scratch_operands = 1 : i64, tpu.core_type = #tpu.core_type<tc>, window_params = [{transform_indices = @transform_0, window_bounds = array<i64: 1, 4, 384>}, {pipeline_mode = #tpu.pipeline_mode<synchronous>, transform_indices = @transform_1, window_bounds = array<i64: 8, 36>}, {pipeline_mode = #tpu.pipeline_mode<synchronous>, transform_indices = @transform_2, window_bounds = array<i64: 8, 1>}, {pipeline_mode = #tpu.pipeline_mode<synchronous>, transform_indices = @transform_3, window_bounds = array<i64: 1, 384>}, {transform_indices = @transform_4, window_bounds = array<i64: 1, 8, 384>}]} {
    %c0 = arith.constant 0 : index
    %c0_0 = arith.constant 0 : index
    %c0_1 = arith.constant 0 : index
    %0 = vector.load %arg1[%c0, %c0_0, %c0_1] : memref<1x4x384xbf16, #tpu.memory_space<vmem>>, vector<1x4x384xbf16>
    %1 = vector.shape_cast %0 : vector<1x4x384xbf16> to vector<4x384xbf16>
    %2 = arith.extf %1 : vector<4x384xbf16> to vector<4x384xf32>
    %c0_2 = arith.constant 0 : index
    %c0_3 = arith.constant 0 : index
    %3 = vector.load %arg6[%c0_2, %c0_3] : memref<36x384xf32, #tpu.memory_space<vmem>>, vector<4x384xf32>
    tpu.vector_store %arg6[%c0_2, %c0_3], %2 {strides = array<i32>} : memref<36x384xf32, #tpu.memory_space<vmem>>, vector<4x384xf32>,
    %c383_i32 = arith.constant 383 : i32
    %4 = tpu.dynamic_rotate %2 by %c383_i32 dim 1 : vector<4x384xf32>, i32 -> vector<4x384xf32>
    %c4 = arith.constant 4 : index
    %c0_4 = arith.constant 0 : index
    %5 = vector.load %arg6[%c4, %c0_4] : memref<36x384xf32, #tpu.memory_space<vmem>>, vector<4x384xf32>
    tpu.vector_store %arg6[%c4, %c0_4], %4 {strides = array<i32>} : memref<36x384xf32, #tpu.memory_space<vmem>>, vector<4x384xf32>,
    %c382_i32 = arith.constant 382 : i32
    %6 = tpu.dynamic_rotate %2 by %c382_i32 dim 1 : vector<4x384xf32>, i32 -> vector<4x384xf32>
    %c8 = arith.constant 8 : index
    %c0_5 = arith.constant 0 : index
    %7 = vector.load %arg6[%c8, %c0_5] : memref<36x384xf32, #tpu.memory_space<vmem>>, vector<4x384xf32>
    tpu.vector_store %arg6[%c8, %c0_5], %6 {strides = array<i32>} : memref<36x384xf32, #tpu.memory_space<vmem>>, vector<4x384xf32>,
    %c366_i32 = arith.constant 366 : i32
    %8 = tpu.dynamic_rotate %2 by %c366_i32 dim 1 : vector<4x384xf32>, i32 -> vector<4x384xf32>
    %c12 = arith.constant 12 : index
    %c0_6 = arith.constant 0 : index
    %9 = vector.load %arg6[%c12, %c0_6] : memref<36x384xf32, #tpu.memory_space<vmem>>, vector<4x384xf32>
    tpu.vector_store %arg6[%c12, %c0_6], %8 {strides = array<i32>} : memref<36x384xf32, #tpu.memory_space<vmem>>, vector<4x384xf32>,
    %c365_i32 = arith.constant 365 : i32
    %10 = tpu.dynamic_rotate %2 by %c365_i32 dim 1 : vector<4x384xf32>, i32 -> vector<4x384xf32>
    %c16 = arith.constant 16 : index
    %c0_7 = arith.constant 0 : index
    %11 = vector.load %arg6[%c16, %c0_7] : memref<36x384xf32, #tpu.memory_space<vmem>>, vector<4x384xf32>
    tpu.vector_store %arg6[%c16, %c0_7], %10 {strides = array<i32>} : memref<36x384xf32, #tpu.memory_space<vmem>>, vector<4x384xf32>,
    %c364_i32 = arith.constant 364 : i32
    %12 = tpu.dynamic_rotate %2 by %c364_i32 dim 1 : vector<4x384xf32>, i32 -> vector<4x384xf32>
    %c20 = arith.constant 20 : index
    %c0_8 = arith.constant 0 : index
    %13 = vector.load %arg6[%c20, %c0_8] : memref<36x384xf32, #tpu.memory_space<vmem>>, vector<4x384xf32>
    tpu.vector_store %arg6[%c20, %c0_8], %12 {strides = array<i32>} : memref<36x384xf32, #tpu.memory_space<vmem>>, vector<4x384xf32>,
    %c348_i32 = arith.constant 348 : i32
    %14 = tpu.dynamic_rotate %2 by %c348_i32 dim 1 : vector<4x384xf32>, i32 -> vector<4x384xf32>
    %c24 = arith.constant 24 : index
    %c0_9 = arith.constant 0 : index
    %15 = vector.load %arg6[%c24, %c0_9] : memref<36x384xf32, #tpu.memory_space<vmem>>, vector<4x384xf32>
    tpu.vector_store %arg6[%c24, %c0_9], %14 {strides = array<i32>} : memref<36x384xf32, #tpu.memory_space<vmem>>, vector<4x384xf32>,
    %c347_i32 = arith.constant 347 : i32
    %16 = tpu.dynamic_rotate %2 by %c347_i32 dim 1 : vector<4x384xf32>, i32 -> vector<4x384xf32>
    %c28 = arith.constant 28 : index
    %c0_10 = arith.constant 0 : index
    %17 = vector.load %arg6[%c28, %c0_10] : memref<36x384xf32, #tpu.memory_space<vmem>>, vector<4x384xf32>
    tpu.vector_store %arg6[%c28, %c0_10], %16 {strides = array<i32>} : memref<36x384xf32, #tpu.memory_space<vmem>>, vector<4x384xf32>,
    %c346_i32 = arith.constant 346 : i32
    %18 = tpu.dynamic_rotate %2 by %c346_i32 dim 1 : vector<4x384xf32>, i32 -> vector<4x384xf32>
    %c32 = arith.constant 32 : index
    %c0_11 = arith.constant 0 : index
    %19 = vector.load %arg6[%c32, %c0_11] : memref<36x384xf32, #tpu.memory_space<vmem>>, vector<4x384xf32>
    tpu.vector_store %arg6[%c32, %c0_11], %18 {strides = array<i32>} : memref<36x384xf32, #tpu.memory_space<vmem>>, vector<4x384xf32>,
    %c0_12 = arith.constant 0 : index
    %c0_13 = arith.constant 0 : index
    %20 = vector.load %arg6[%c0_12, %c0_13] : memref<36x384xf32, #tpu.memory_space<vmem>>, vector<36x384xf32>
    %21 = arith.truncf %20 : vector<36x384xf32> to vector<36x384xbf16>
    %c0_14 = arith.constant 0 : index
    %c0_15 = arith.constant 0 : index
    %22 = vector.load %arg2[%c0_14, %c0_15] : memref<8x36xbf16, #tpu.memory_space<vmem>>, vector<8x36xbf16>
    %cst = arith.constant dense<0.000000e+00> : vector<8x384xf32>
    %23 = tpu.matmul %22, %21, %cst {dimension_numbers = #tpu.dot_dimension_numbers<[1], [0], [0], [1], [0, 0, 1, 1], [], []>} : vector<8x36xbf16>, vector<36x384xbf16>, vector<8x384xf32> -> vector<8x384xf32>
    %c0_16 = arith.constant 0 : index
    %c0_17 = arith.constant 0 : index
    %24 = vector.load %arg3[%c0_16, %c0_17] : memref<8x1xf32, #tpu.memory_space<vmem>>, vector<8x1xf32>
    %25 = vector.broadcast %24 : vector<8x1xf32> to vector<8x384xf32>
    %26 = arith.addf %23, %25 : vector<8x384xf32>
    %c0_18 = arith.constant 0 : index
    %c0_19 = arith.constant 0 : index
    %27 = vector.load %arg4[%c0_18, %c0_19] : memref<1x384xf32, #tpu.memory_space<vmem>>, vector<1x384xf32>
    %28 = vector.broadcast %27 : vector<1x384xf32> to vector<8x384xf32>
    %29 = arith.mulf %26, %28 : vector<8x384xf32>
    %cst_20 = arith.constant dense<0.000000e+00> : vector<8xf32>
    %30 = vector.multi_reduction <add>, %29, %cst_20 [1] : vector<8x384xf32> to vector<8xf32>
    %31 = vector.shape_cast %30 : vector<8xf32> to vector<8x1xf32>
    %32 = arith.mulf %29, %26 : vector<8x384xf32>
    %cst_21 = arith.constant dense<0.000000e+00> : vector<8xf32>
    %33 = vector.multi_reduction <add>, %32, %cst_21 [1] : vector<8x384xf32> to vector<8xf32>
    %34 = vector.shape_cast %33 : vector<8xf32> to vector<8x1xf32>
    %cst_22 = arith.constant 3.906250e-03 : f32
    %35 = vector.broadcast %cst_22 : f32 to vector<8x1xf32>
    %36 = arith.mulf %31, %35 : vector<8x1xf32>
    %cst_23 = arith.constant 3.906250e-03 : f32
    %37 = vector.broadcast %cst_23 : f32 to vector<8x1xf32>
    %38 = arith.mulf %34, %37 : vector<8x1xf32>
    %39 = arith.mulf %36, %36 : vector<8x1xf32>
    %40 = arith.subf %38, %39 : vector<8x1xf32>
    %cst_24 = arith.constant 9.99999974E-6 : f32
    %41 = vector.broadcast %cst_24 : f32 to vector<8x1xf32>
    %42 = arith.addf %40, %41 : vector<8x1xf32>
    %43 = math.rsqrt %42 : vector<8x1xf32>
    %44 = vector.broadcast %36 : vector<8x1xf32> to vector<8x384xf32>
    %45 = arith.subf %26, %44 : vector<8x384xf32>
    %46 = vector.broadcast %43 : vector<8x1xf32> to vector<8x384xf32>
    %47 = arith.mulf %45, %46 : vector<8x384xf32>
    %cst_25 = arith.constant 0.000000e+00 : f32
    %48 = vector.broadcast %cst_25 : f32 to vector<8x384xf32>
    %49 = arith.cmpf oge, %47, %48 : vector<8x384xf32>
    %cst_26 = arith.constant 2.500000e-01 : f32
    %50 = vector.broadcast %cst_26 : f32 to vector<8x384xf32>
    %51 = arith.mulf %50, %47 : vector<8x384xf32>
    %52 = arith.select %49, %47, %51 : vector<8x384xi1>, vector<8x384xf32>
    %c0_27 = arith.constant 0 : index
    %c0_28 = arith.constant 0 : index
    %c0_29 = arith.constant 0 : index
    %53 = vector.load %arg5[%c0_27, %c0_28, %c0_29] : memref<1x8x384xf32, #tpu.memory_space<vmem>>, vector<1x8x384xf32>
    %54 = vector.shape_cast %53 : vector<1x8x384xf32> to vector<8x384xf32>
    %55 = vector.shape_cast %52 : vector<8x384xf32> to vector<1x8x384xf32>
    tpu.vector_store %arg5[%c0_27, %c0_28, %c0_29], %55 {strides = array<i32>} : memref<1x8x384xf32, #tpu.memory_space<vmem>>, vector<1x8x384xf32>,
    return
  }
  func.func @transform_0(%arg0: i32) -> (i32, i32, i32) {
    %c0_i32 = arith.constant 0 : i32
    %c0_i32_0 = arith.constant 0 : i32
    %c0_i32_1 = arith.constant 0 : i32
    return %arg0, %c0_i32, %c0_i32_0 : i32, i32, i32
  }
  func.func @transform_1(%arg0: i32) -> (i32, i32) {
    %c0_i32 = arith.constant 0 : i32
    %c0_i32_0 = arith.constant 0 : i32
    %c0_i32_1 = arith.constant 0 : i32
    return %c0_i32, %c0_i32_0 : i32, i32
  }
  func.func @transform_2(%arg0: i32) -> (i32, i32) {
    %c0_i32 = arith.constant 0 : i32
    %c0_i32_0 = arith.constant 0 : i32
    %c0_i32_1 = arith.constant 0 : i32
    return %c0_i32, %c0_i32_0 : i32, i32
  }
  func.func @transform_3(%arg0: i32) -> (i32, i32) {
    %c0_i32 = arith.constant 0 : i32
    %c0_i32_0 = arith.constant 0 : i32
    %c0_i32_1 = arith.constant 0 : i32
    return %c0_i32, %c0_i32_0 : i32, i32
  }
  func.func @transform_4(%arg0: i32) -> (i32, i32, i32) {
    %c0_i32 = arith.constant 0 : i32
    %c0_i32_0 = arith.constant 0 : i32
    %c0_i32_1 = arith.constant 0 : i32
    return %arg0, %c0_i32, %c0_i32_0 : i32, i32, i32
  }
}

</mosaic_0001>

<bundles_post_ra>
// kernel: monai_network_forward.1
= control target key start
LH: loop header
LB: loop body
LE: loop exit
PB: predicated region body
PF: predicated region fallthrough
CT: control target
= control target key end

     0   :  { %s720_s15 = smov 0   ;;  %s805_s0 = inlined_call_operand.vmem [shape: bf16[2,4,384], index: 0, kind: input, shape index: {}]   ;;  %s806_s1 = inlined_call_operand.vmem [shape: bf16[8,36], index: 1, kind: input, shape index: {}]   ;;  %s807_s2 = inlined_call_operand.vmem [shape: f32[8,1], index: 2, kind: input, shape index: {}]   ;;  %s808_s3 = inlined_call_operand.vmem [shape: f32[1,384], index: 3, kind: input, shape index: {}]   ;;  %s809_s4 = inlined_call_operand.vmem [shape: f32[2,8,384], index: 4, kind: output, shape index: {}]  }
   0x1 LB: > { %s586_s16 = sadd.s32 4294967295, %s682_s15   ;;  %p590_p0 = scmp.ge.s32.totalorder %s682_s15, 1  ;;  %s682_s15 = sphi %s720_s15, %s14_s15  }
   0x2   : > { %p162_p1 = scmp.lt.s32.totalorder %s682_s15, 3 }
   0x4   : > { %p163_p2 = pnand %p590_p0, %p162_p1 }
   0x5   : > { %p188_p3 = scmp.lt.s32.totalorder (!%p163_p2), %s586_s16, 1  ;;  %s684_s21 = smov (!%p163_p2), 90  }
   0x6   : > { %166 = sbr.rel (%p163_p2) target bundleno = 548 (0x224), region = 36  ;;  %s685_s22 = smov (!%p163_p2), 91  }
   0x7   : > { %s686_s23 = smov (!%p163_p2), 108   ;;  %s688_s24 = smov (!%p163_p2), 92  }
   0x8   : > { %s689_s25 = smov (!%p163_p2), 109   ;;  %s690_s26 = smov (!%p163_p2), 127  }
   0x9   : > { %s691_s27 = smov (!%p163_p2), 110   ;;  %s692_s28 = smov (!%p163_p2), 126  }
   0xb   : > { %s811_s16 = smov (!%p188_p3, %s586_s16), 1  ;;  %v687_v6 = vmov 0.0   ;;  %vm693_vm0 = vmmov 0   ;;  %v694_v7 = vmov 0   ;;  %v375_v8 = vld [vmem:[%s807_s2] sm:$0xff]  ;;  %v214_v9 = vlaneseq }
   0xc   : > { %s612_s17 = smul.u32 6, %s811_s16  ;;  %602 = vmatprep.subr.bf16.mxu1 %v687_v6  ;;  %608 = vmatprep.mubr.msk.bf16.mxu1 %vm693_vm0, %v687_v6  ;;  %vm385_vm6 = vcmask 1041408   ;;  %vm381_vm10 = vcmask 293888  }
   0xd   : > { %427 = vmatprep.mubr.bf16.mxu0 %v694_v7  ;;  %673 = vset.pattern.permute.xlu0 %v694_v7  ;;  %v740_v12 = vand.u32 127, %v214_v9  ;;  %s613_s9 = smul.u32 24, %s811_s16 }
   0xe   : > { %s192_s20 = scalar_lea.vmem %s805_s0, %s612_s17 }
   0xf   : > { %v199_v0 = vld [vmem:[%s192_s20] sm:$0x3f]  ;;  %vm286_vm1 = vcmp.lt.s32.totalorder %v740_v12, 108  ;;  %vm321_vm2 = vcmp.lt.s32.totalorder %v740_v12, 91  ;;  %vm343_vm3 = vcmp.lt.s32.totalorder %v740_v12, 90  ;;  %vm308_vm4 = vcmp.lt.s32.totalorder %v740_v12, 92  ;;  %s197_s12 = scalar_lea.vmem %s809_s4, %s613_s9 }
  0x10   : > { %v201_v1 = vunpack.c.h.bf16 %v199_v0  ;;  %v200_v2 = vunpack.c.l.bf16 %v199_v0  ;;  %vm273_vm5 = vcmp.lt.s32.totalorder %v740_v12, 109  ;;  %vm216_vm7 = vcmp.lt.s32.totalorder %v740_v12, 127 }
  0x11   : > { %vm251_vm8 = vcmp.lt.s32.totalorder %v740_v12, 110  ;;  %vm238_vm9 = vcmp.lt.s32.totalorder %v740_v12, 126 }
  0x12   : > { %341 = vrot.lane.b32.xlu0 %v201_v1, %s684_s21  ;;  %205 = vst [vmem:[#allocation2 + $0x30] sm:$0xf] %v200_v2  ;;  %207 = vst [vmem:[#allocation2 + $0x58] sm:$0xf] %v201_v1  ;;  %315 = vrot.lane.b32.xlu1 %v200_v2, %s685_s22  ;;  %v203_v3 = vcombine.high %v200_v2, %v200_v2 }
  0x14   : > { %v638_v4 = vpack.i.bf16 %v201_v1, %v203_v3  ;;  %206 = vst [vmem:[#allocation2] sm:$0xf] %v203_v3  ;;  %v633_v5 = vpack.i.bf16 %v203_v3, %v200_v2 }
  0x16   : > { %280 = vrot.lane.b32.xlu0 %v200_v2, %s686_s23  ;;  %639 = vrot.lane.b32.xlu1 %v638_v4, %s686_s23 }
  0x1a   : > { %644 = vrot.lane.b32.xlu1 %v638_v4, %s685_s22  ;;  %634 = vrot.lane.b32.xlu0 %v633_v5, %s684_s21 }
  0x1e   : > { %654 = vrot.lane.b32.xlu1 %v638_v4, %s688_s24  ;;  %649 = vrot.lane.b32.xlu0 %v638_v4, %s689_s25 }
  0x22   : > { %302 = vrot.lane.b32.xlu1 %v200_v2, %s688_s24  ;;  %267 = vrot.lane.b32.xlu0 %v200_v2, %s689_s25 }
  0x26   : > { %659 = vrot.lane.b32.xlu0 %v638_v4, %s690_s26  ;;  %664 = vrot.lane.b32.xlu1 %v638_v4, %s691_s27 }
  0x2a   : > { %208 = vrot.lane.b32.xlu0 %v200_v2, %s690_s26  ;;  %245 = vrot.lane.b32.xlu1 %v200_v2, %s691_s27 }
  0x2e   : > { %669 = vrot.lane.b32.xlu0 %v638_v4, %s692_s28  ;;  %232 = vrot.lane.b32.xlu1 %v200_v2, %s692_s28 }
  0x32   : > { %378 = vperm.xlu0 %673, %v375_v8  }
  0x84   : > { %v342_v10 = vpop.permute.xlu0 %341  ;;  %v316_v11 = vpop.permute.xlu1 %315 }
  0x88   : > { %v281_v13 = vpop.permute.xlu0 %280  ;;  %v640_v14 = vpop.permute.xlu1 %639 }
  0x89   : > { %v642_v15 = vunpack.i.h.bf16 %v640_v14  ;;  %v641_v16 = vunpack.i.l.bf16 %v640_v14 }
  0x8b   : > { %v289_v17 = vsel %vm286_vm1, %v642_v15, %v281_v13  ;;  %v287_v18 = vsel %vm286_vm1, %v641_v16, %v642_v15  ;;  %v288_v19 = vsel %vm286_vm1, %v281_v13, %v641_v16 }
  0x8c   : > { %v295_v20 = vrot.slane %v289_v17, 4  ;;  %v293_v21 = vrot.slane %v288_v19, 4  ;;  %v294_v22 = vrot.slane %v287_v18, 4  ;;  %v645_v23 = vpop.permute.xlu1 %644  ;;  %v635_v24 = vpop.permute.xlu0 %634 }
  0x8d   : > { %v647_v25 = vunpack.i.h.bf16 %v645_v23  ;;  %v646_v26 = vunpack.i.l.bf16 %v645_v23  ;;  %v637_v27 = vunpack.i.h.bf16 %v635_v24  ;;  %v636_v28 = vunpack.i.l.bf16 %v635_v24 }
  0x8e   : > { %301 = vst [vmem:[#allocation2 + $0x40] sm:$0xf0] %v295_v20  ;;  %299 = vst [vmem:[#allocation2 + $0x8] sm:$0xf0] %v293_v21 }
  0x8f   : > { %300 = vst [vmem:[#allocation2 + $0x48] sm:$0xf0] %v294_v22  ;;  %v324_v29 = vsel %vm321_vm2, %v647_v25, %v316_v11  ;;  %v322_v30 = vsel %vm321_vm2, %v646_v26, %v647_v25  ;;  %v323_v31 = vsel %vm321_vm2, %v316_v11, %v646_v26  ;;  %v344_v32 = vsel %vm343_vm3, %v637_v27, %v342_v10 }
  0x90   : > { %v330_v33 = vrot.slane %v324_v29, 4  ;;  %v328_v34 = vrot.slane %v323_v31, 4  ;;  %v329_v35 = vrot.slane %v322_v30, 4  ;;  %348 = vst [vmem:[#allocation2 + $0x70] sm:$0xf] %v344_v32  ;;  %v345_v36 = vsel %vm343_vm3, %v636_v28, %v637_v27  ;;  %v655_v37 = vpop.permute.xlu1 %654  ;;  %v650_v38 = vpop.permute.xlu0 %649 }
  0x91   : > { %v346_v39 = vsel %vm343_vm3, %v342_v10, %v636_v28  ;;  %347 = vst [vmem:[#allocation2 + $0x60] sm:$0xf] %v345_v36  ;;  %v657_v40 = vunpack.i.h.bf16 %v655_v37  ;;  %v656_v41 = vunpack.i.l.bf16 %v655_v37  ;;  %v652_v42 = vunpack.i.h.bf16 %v650_v38 }
  0x92   : > { %336 = vst [vmem:[#allocation2 + $0x38] sm:$0xf0] %v330_v33  ;;  %334 = vst [vmem:[#allocation2 + $0x20] sm:$0xf0] %v328_v34  ;;  %v651_v43 = vunpack.i.l.bf16 %v650_v38 }
  0x93   : > { %335 = vst [vmem:[#allocation2 + $0x10] sm:$0xf0] %v329_v35  ;;  %349 = vst [vmem:[#allocation2 + $0x28] sm:$0xf] %v346_v39  ;;  %v309_v44 = vsel %vm308_vm4, %v656_v41, %v657_v40 }
  0x94   : > { %v303_v45 = vpop.permute.xlu1 %302  ;;  %313 = vst [vmem:[#allocation2 + $0x10] sm:$0xf] %v309_v44  ;;  %v268_v46 = vpop.permute.xlu0 %267  ;;  %v274_v47 = vsel %vm273_vm5, %v651_v43, %v652_v42 }
  0x95   : > { %v310_v48 = vsel %vm308_vm4, %v303_v45, %v656_v41  ;;  %v311_v49 = vsel %vm308_vm4, %v657_v40, %v303_v45  ;;  %v275_v50 = vsel %vm273_vm5, %v268_v46, %v651_v43  ;;  %v276_v51 = vsel %vm273_vm5, %v652_v42, %v268_v46  ;;  %278 = vst [vmem:[#allocation2 + $0x48] sm:$0xf] %v274_v47  ;;  %v476_v45 = vld [vmem:[%s808_s3] sm:$0x7] }
  0x96   : > { %312 = vst [vmem:[#allocation2 + $0x20] sm:$0xf] %v310_v48  ;;  %314 = vst [vmem:[#allocation2 + $0x38] sm:$0xf] %v311_v49  ;;  %v479_v43 = vshrl.u32 %v214_v9, 7 }
  0x97   : > { %277 = vst [vmem:[#allocation2 + $0x8] sm:$0xf] %v275_v50  ;;  %279 = vst [vmem:[#allocation2 + $0x40] sm:$0xf] %v276_v51  ;;  %v363_v52 = vld [vmem:[#allocation2 + $0x70] sm:$0xf] }
  0x98   : > { %v660_v53 = vpop.permute.xlu0 %659  ;;  %v665_v54 = vpop.permute.xlu1 %664  ;;  %v372_v55 = vpack.c.bf16 %v363_v52, %v363_v52  ;;  %v362_v56 = vld [vmem:[#allocation2 + $0x60] sm:$0xf]  ;;  %v480_v44 = vsub.s32 0, %v479_v43  ;;  %v484_v46 = vsub.s32 1, %v479_v43  ;;  %v488_v47 = vsub.s32 2, %v479_v43 }
  0x99   : > { %v662_v57 = vunpack.i.h.bf16 %v660_v53  ;;  %v661_v58 = vunpack.i.l.bf16 %v660_v53  ;;  %v667_v59 = vunpack.i.h.bf16 %v665_v54  ;;  %v666_v60 = vunpack.i.l.bf16 %v665_v54 }
  0x9a   : > { %v364_v61 = vld [vmem:[#allocation2 + $0x28] sm:$0xf]  ;;  %593 = vmatprep.subr.msk.bf16.mxu0 %vm385_vm6, %v372_v55  ;;  %v371_v62 = vpack.c.bf16 %v362_v56, %v362_v56  ;;  %v481_v50 = vrot.slane %v476_v45, %v480_v44  ;;  %v485_v55 = vrot.slane %v476_v45, %v484_v46  ;;  %v489_v56 = vrot.slane %v476_v45, %v488_v47 }
  0x9b   : > { %v373_v63 = vpack.c.bf16 %v364_v61, %v364_v61  ;;  %v217_v0 = vsel %vm216_vm7, %v661_v58, %v662_v57  ;;  %v252_v1 = vsel %vm251_vm8, %v666_v60, %v667_v59  ;;  %v360_v11 = vld [vmem:[#allocation2 + $0x10] sm:$0xff] }
  0x9c   : > { %v387_v2 = vsel %vm385_vm6, %v371_v62, 0  ;;  %v209_v4 = vpop.permute.xlu0 %208  ;;  %v224_v5 = vrot.slane %v217_v0, 4  ;;  %v246_v7 = vpop.permute.xlu1 %245  ;;  %v259_v8 = vrot.slane %v252_v1, 4  ;;  %v357_v10 = vld [vmem:[#allocation2 + $0x48] sm:$0xff] }
  0x9d   : > { %v393_v3 = vsel %vm385_vm6, %v373_v63, 0  ;;  %406 = vmatpush1.bf16.msra.mxu0 %v387_v2  ;;  %v218_v13 = vsel %vm216_vm7, %v209_v4, %v661_v58  ;;  %v219_v14 = vsel %vm216_vm7, %v662_v57, %v209_v4  ;;  %v253_v15 = vsel %vm251_vm8, %v246_v7, %v666_v60  ;;  %v359_v17 = vld [vmem:[#allocation2 + $0x20] sm:$0xff]  ;;  %v361_v23 = vld [vmem:[#allocation2 + $0x38] sm:$0xff] }
  0x9e   : > { %603 = vmatpush3.bf16.msra.mxu1 %v393_v3  ;;  %v356_v16 = vld [vmem:[#allocation2 + $0x8] sm:$0xff]  ;;  %v358_v18 = vld [vmem:[#allocation2 + $0x40] sm:$0xff]  ;;  %v223_v19 = vrot.slane %v218_v13, 4  ;;  %v225_v20 = vrot.slane %v219_v14, 4  ;;  %230 = vst [vmem:[#allocation2] sm:$0xf0] %v224_v5  ;;  %v254_v21 = vsel %vm251_vm8, %v667_v59, %v246_v7  ;;  %v369_v25 = vpack.c.bf16 %v360_v11, %v357_v10 }
  0x9f   : > { %v258_v22 = vrot.slane %v253_v15, 4  ;;  %265 = vst [vmem:[#allocation2 + $0x50] sm:$0xf0] %v259_v8  ;;  %604 = vmatprep.subr.bf16.mxu1 %v687_v6  ;;  %v260_v24 = vrot.slane %v254_v21, 4  ;;  %v368_v26 = vpack.c.bf16 %v359_v17, %v356_v16  ;;  %v370_v27 = vpack.c.bf16 %v361_v23, %v358_v18 }
  0xa0   : > { %229 = vst [vmem:[#allocation2 + $0x30] sm:$0xf0] %v223_v19  ;;  %231 = vst [vmem:[#allocation2 + $0x58] sm:$0xf0] %v225_v20  ;;  %v670_v28 = vpop.permute.xlu0 %669  ;;  %v233_v29 = vpop.permute.xlu1 %232  ;;  %407 = vmatprep.subr.bf16.mxu0 %v369_v25 }
  0xa1   : > { %264 = vst [vmem:[#allocation2 + $0x18] sm:$0xf0] %v258_v22  ;;  %266 = vst [vmem:[#allocation2 + $0x68] sm:$0xf0] %v260_v24  ;;  %v672_v30 = vunpack.i.h.bf16 %v670_v28  ;;  %v671_v31 = vunpack.i.l.bf16 %v670_v28  ;;  %408 = vmatpush1.bf16.msra.mxu0 %v368_v26 }
  0xa2   : > { %605 = vmatpush3.bf16.msra.mxu1 %v370_v27 }
  0xa3   : > { %606 = vmatprep.subr.bf16.mxu1 %v687_v6  ;;  %v239_v32 = vsel %vm238_vm9, %v671_v31, %v672_v30  ;;  %v240_v33 = vsel %vm238_vm9, %v233_v29, %v671_v31  ;;  %v241_v34 = vsel %vm238_vm9, %v672_v30, %v233_v29  ;;  %v374_v6 = vld [vmem:[%s806_s1] sm:$0xf] }
  0xa4   : > { %242 = vst [vmem:[#allocation2 + $0x18] sm:$0xf] %v240_v33  ;;  %243 = vst [vmem:[#allocation2 + $0x50] sm:$0xf] %v239_v32 }
  0xa5   : > { %244 = vst [vmem:[#allocation2 + $0x68] sm:$0xf] %v241_v34  ;;  %v351_v35 = vld [vmem:[#allocation2] sm:$0xff] }
  0xa7   : > { %v352_v36 = vld [vmem:[#allocation2 + $0x58] sm:$0xff]  ;;  %v350_v37 = vld [vmem:[#allocation2 + $0x30] sm:$0xff] }
  0xab   : > { %v354_v38 = vld [vmem:[#allocation2 + $0x50] sm:$0xff]  ;;  %v353_v39 = vld [vmem:[#allocation2 + $0x18] sm:$0xff] }
  0xac   : > { %v355_v12 = vld [vmem:[#allocation2 + $0x68] sm:$0xff]  ;;  %v366_v40 = vpack.c.bf16 %v354_v38, %v351_v35  ;;  %v365_v42 = vpack.c.bf16 %v353_v39, %v350_v37 }
  0xad   : > { %v367_v41 = vpack.c.bf16 %v355_v12, %v352_v36  ;;  %v379_v48 = vpop.permute.xlu0 %378 }
  0xae   : > { %409 = vmatprep.subr.bf16.mxu0 %v366_v40 }
  0xaf   : > { %607 = vmatpush3.bf16.msra.mxu1 %v367_v41  ;;  %410 = vmatpush1.bf16.msra.mxu0 %v365_v42 }
  0xb2   : > { %609 = vmatmul.mubr.msk.bf16.vlgmr.msra.gmra.mxu1 %vm381_vm10, %v374_v6  ;;  %594 = vmatmul.mubr.msk.bf16.vlgmr.msra.gmra.mxu0 %vm381_vm10, %v374_v6 }
 0x172   : > { %v470_v49 = vpop.f32.mrf.mxu1  ;;  %v429_v51 = vpop.f32.mrf.mxu0 }
 0x173   : > { %v471_v52 = vadd.f32 %v470_v49, %v379_v48  ;;  %v430_v53 = vadd.f32 %v429_v51, %v379_v48 }
 0x174   : > { %v610_v54 = vpop.f32.mrf.mxu1  ;;  %v431_v57 = vpop.f32.mrf.mxu0 }
 0x175   : > { %v493_v58 = vmul.f32 %v481_v50, %v430_v53  ;;  %v432_v59 = vadd.f32 %v431_v57, %v379_v48  ;;  %v495_v63 = vmul.f32 %v489_v56, %v471_v52 }
 0x176   : > { %v473_v9 = vpop.f32.mrf.mxu1  ;;  %v433_v60 = vpop.f32.mrf.mxu0 }
 0x177   : > { %v494_v61 = vmul.f32 %v485_v55, %v432_v59  ;;  %v500_v1 = vmul.f32 %v493_v58, %v430_v53  ;;  %v502_v5 = vmul.f32 %v495_v63, %v471_v52 }
 0x178   : > { %v611_v62 = vpop.f32.mrf.mxu1  ;;  %v434_v0 = vpop.f32.mrf.mxu0 }
 0x179   : > { %v501_v2 = vmul.f32 %v494_v61, %v432_v59  ;;  %v496_v3 = vadd.f32 %v494_v61, %v493_v58 }
 0x17b   : > { %v497_v4 = vadd.f32 %v496_v3, %v495_v63  ;;  %v503_v7 = vadd.f32 %v501_v2, %v500_v1 }
 0x17d   : > { %498 = vadd.xlane.f32.xlu1 %v497_v4  ;;  %v504_v8 = vadd.f32 %v503_v7, %v502_v5 }
 0x17f   : > { %505 = vadd.xlane.f32.xlu0 %v504_v8 }
 0x206   : > { %v499_v10 = vpop.xlane.xlu1 %498 }
 0x207   : > { %v507_v11 = vmul.f32 0.00390625, %v499_v10 }
 0x208   : > { %v506_v13 = vpop.xlane.xlu0 %505 }
 0x209   : > { %v508_v14 = vmul.f32 0.00390625, %v506_v13  ;;  %v509_v15 = vmul.f32 %v507_v11, %v507_v11  ;;  %v513_v18 = vsub.f32 %v430_v53, %v507_v11  ;;  %v514_v19 = vsub.f32 %v432_v59, %v507_v11 }
 0x20a   : > { %v515_v20 = vsub.f32 %v471_v52, %v507_v11 }
 0x20b   : > { %v510_v16 = vsub.f32 %v508_v14, %v509_v15 }
 0x20d   : > { %v511_v17 = vadd.f32 1e-05, %v510_v16 }
 0x20f   : > { %674 = vrsqrt.f32 %v511_v17 }
 0x21c   : > { %v675_v21 = vpop.eup %674 }
 0x21d   : > { %v516_v22 = vmul.f32 %v675_v21, %v513_v18  ;;  %v517_v23 = vmul.f32 %v675_v21, %v514_v19  ;;  %v518_v24 = vmul.f32 %v675_v21, %v515_v20 }
 0x21f   : > { %vm519_vm11 = vcmp.ge.f32.partialorder %v516_v22, 0.0  ;;  %vm520_vm12 = vcmp.ge.f32.partialorder %v517_v23, 0.0  ;;  %vm521_vm13 = vcmp.ge.f32.partialorder %v518_v24, 0.0  ;;  %v522_v25 = vmul.f32 0.25, %v516_v22 }
 0x220   : > { %v523_v26 = vmul.f32 0.25, %v517_v23  ;;  %v524_v27 = vmul.f32 0.25, %v518_v24 }
 0x221   : > { %v525_v28 = vsel %vm519_vm11, %v516_v22, %v522_v25 }
 0x222   : > { %v526_v29 = vsel %vm520_vm12, %v517_v23, %v523_v26  ;;  %v527_v30 = vsel %vm521_vm13, %v518_v24, %v524_v27  ;;  %528 = vst [vmem:[%s197_s12] sm:$0xff] %v525_v28 }
 0x223   : > { %529 = vst [vmem:[%s197_s12 + $0x8] sm:$0xff] %v526_v29  ;;  %530 = vst [vmem:[%s197_s12 + $0x10] sm:$0xff] %v527_v30 }
 0x224 PF: > { %s14_s15 = sadd.s32 1, %s682_s15  }
 0x225   : > { %p11_p4 = scmp.ge.s32.totalorder %s14_s15, 4  }
 0x227   :  { %13 = sbr.rel (!%p11_p4) target bundleno = 1 (0x1), region = 66 }

</bundles_post_ra>
